<compile_context>
chip_gen: v6e
topology: v6e:2x2x1
jax: 0.10.0
libtpu: 0.0.40
codegen_flags: <defaults>
</compile_context>

<pallas_src>
import functools

import jax
import jax.numpy as jnp
from jax.experimental import pallas as pl
from jax.experimental.pallas import tpu as pltpu


LANE = 128      # vreg lane width / MXU output alignment
SUBLANE = 8     # f32 sublane count


def _round_up(v, m):
    return ((v + m - 1) // m) * m


def _two_layer_kernel(x_ref, w1t_ref, b1_ref, w2t_ref, b2_ref, o_ref):
    # Layer 1: bf16 x bf16 -> f32 accumulation on the MXU.
    h = jnp.dot(x_ref[...], w1t_ref[...], preferred_element_type=jnp.float32)
    # Bias add + ReLU (clamp(min=0)) in f32 on the VPU.
    h = jnp.maximum(h + b1_ref[...], 0.0)
    # Layer 2: cast activation back to the matmul dtype, f32 accumulation.
    y = jnp.dot(h.astype(w2t_ref.dtype), w2t_ref[...],
                preferred_element_type=jnp.float32)
    o_ref[...] = (y + b2_ref[...]).astype(o_ref.dtype)


def prepare_params(w1, b1, w2, b2, *, compute_dtype=jnp.bfloat16):
    """One-time parameter prep (do at init, NOT per forward call).

    Transposes the PyTorch-layout weights ([out, in]) to row-major matmul
    layout and zero-pads H / D_out up to multiples of 128 so the kernel's
    matmuls and the output store are lane-dense. The zero padding contributes
    exactly zero to the result (padded h columns are relu(0 + 0) = 0).
    """
    H, D_in = w1.shape
    D_out = w2.shape[0]
    HP = _round_up(H, LANE)
    DP = _round_up(D_out, LANE)

    w1t = jnp.zeros((D_in, HP), compute_dtype).at[:, :H].set(
        w1.T.astype(compute_dtype))
    b1p = jnp.zeros((1, HP), jnp.float32).at[:, :H].set(
        b1.astype(jnp.float32))
    w2t = jnp.zeros((HP, DP), compute_dtype).at[:H, :D_out].set(
        w2.T.astype(compute_dtype))
    b2p = jnp.zeros((1, DP), jnp.float32).at[:, :D_out].set(
        b2.astype(jnp.float32))
    return w1t, b1p, w2t, b2p


@functools.partial(jax.jit, static_argnames=("d_out", "tm"))
def two_layer_net(x, w1t, b1p, w2t, b2p, *, d_out, tm=256):
    """Forward pass. x: [N, D_in]; returns [N, d_out] in x.dtype."""
    N, D_in = x.shape
    HP = w1t.shape[1]
    DP = w2t.shape[1]
    compute_dtype = w1t.dtype

    # Row tile: multiple of the 8-row sublane, clamped for tiny batches.
    tm_eff = min(_round_up(tm, SUBLANE), _round_up(N, SUBLANE))
    NP = _round_up(N, tm_eff)

    xc = x.astype(compute_dtype)        # halve x's HBM->VMEM traffic
    if NP != N:
        xc = jnp.pad(xc, ((0, NP - N), (0, 0)))

    grid = (pl.cdiv(NP, tm_eff),)

    out = pl.pallas_call(
        _two_layer_kernel,
        out_shape=jax.ShapeDtypeStruct((NP, DP), x.dtype),
        grid_spec=pltpu.PrefetchScalarGridSpec(
            num_scalar_prefetch=0,
            grid=grid,
            in_specs=[
                # x tile marches down the rows with the grid step.
                pl.BlockSpec((tm_eff, D_in), lambda i: (i, 0)),
                # Weights / biases: same block every step -> VMEM-resident,
                # DMA'd once for the whole grid.
                pl.BlockSpec((D_in, HP), lambda i: (0, 0)),
                pl.BlockSpec((1, HP), lambda i: (0, 0)),
                pl.BlockSpec((HP, DP), lambda i: (0, 0)),
                pl.BlockSpec((1, DP), lambda i: (0, 0)),
            ],
            out_specs=pl.BlockSpec((tm_eff, DP), lambda i: (i, 0)),
        ),
        compiler_params=pltpu.CompilerParams(
            # Rows are independent -> shardable across v7x's 2 TensorCores.
            dimension_semantics=("parallel",),
        ),
    )(xc, w1t, b1p, w2t, b2p)

    # Strip row padding and the lane padding on D_out.
    return out[:N, :d_out]


if __name__ == "__main__":
    # Small shapes consistent with the module: N x D_in -> H -> D_out.
    N, D_in, H, D_out = 8, 32, 64, 16

    key = jax.random.PRNGKey(0)
    kx, kw1, kb1, kw2, kb2 = jax.random.split(key, 5)

    x = jax.random.normal(kx, (N, D_in), dtype=jnp.float32)
    # Deterministic parameter init (PyTorch-Linear-like uniform bounds).
    bound1 = 1.0 / (D_in ** 0.5)
    bound2 = 1.0 / (H ** 0.5)
    w1 = jax.random.uniform(kw1, (H, D_in), minval=-bound1, maxval=bound1,
                            dtype=jnp.float32)
    b1 = jax.random.uniform(kb1, (H,), minval=-bound1, maxval=bound1,
                            dtype=jnp.float32)
    w2 = jax.random.uniform(kw2, (D_out, H), minval=-bound2, maxval=bound2,
                            dtype=jnp.float32)
    b2 = jax.random.uniform(kb2, (D_out,), minval=-bound2, maxval=bound2,
                            dtype=jnp.float32)

    params = prepare_params(w1, b1, w2, b2)          # once, at init time
    y = two_layer_net(x, *params, d_out=D_out)
    jax.block_until_ready(y)
    assert y.shape == (N, D_out)

    # Reference that quantizes the matmul inputs to bf16 exactly like the
    # kernel does (f32 accumulation) -> tight tolerance.
    xq = x.astype(jnp.bfloat16).astype(jnp.float32)
    w1q = w1.astype(jnp.bfloat16).astype(jnp.float32)
    w2q = w2.astype(jnp.bfloat16).astype(jnp.float32)
    h_ref = jnp.maximum(xq @ w1q.T + b1, 0.0)
    y_ref = h_ref.astype(jnp.bfloat16).astype(jnp.float32) @ w2q.T + b2
    assert jnp.allclose(y, y_ref, atol=1e-3, rtol=1e-3), (
        float(jnp.max(jnp.abs(y - y_ref))))

    # Loose sanity check against the pure-f32 forward (bf16 input error only).
    y32 = jnp.maximum(x @ w1.T + b1, 0.0) @ w2.T + b2
    assert jnp.allclose(y, y32, atol=5e-2, rtol=5e-2)

    print("KERNEL_OK")
</pallas_src>

<mosaic_0001>
module attributes {stable_mosaic.version = 11 : i64} {
  func.func @_two_layer_kernel(%arg0: i32, %arg1: memref<8x32xbf16, #tpu.memory_space<vmem>>, %arg2: memref<32x128xbf16, #tpu.memory_space<vmem>>, %arg3: memref<1x128xf32, #tpu.memory_space<vmem>>, %arg4: memref<128x128xbf16, #tpu.memory_space<vmem>>, %arg5: memref<1x128xf32, #tpu.memory_space<vmem>>, %arg6: memref<8x128xf32, #tpu.memory_space<vmem>>) attributes {dimension_semantics = [#tpu.dimension_semantics<parallel>], iteration_bounds = array<i64: 1>, scalar_prefetch = 0 : i64, scratch_operands = 0 : i64, tpu.core_type = #tpu.core_type<tc>, window_params = [{transform_indices = @transform_0, window_bounds = array<i64: 8, 32>}, {pipeline_mode = #tpu.pipeline_mode<synchronous>, transform_indices = @transform_1, window_bounds = array<i64: 32, 128>}, {pipeline_mode = #tpu.pipeline_mode<synchronous>, transform_indices = @transform_2, window_bounds = array<i64: 1, 128>}, {pipeline_mode = #tpu.pipeline_mode<synchronous>, transform_indices = @transform_3, window_bounds = array<i64: 128, 128>}, {pipeline_mode = #tpu.pipeline_mode<synchronous>, transform_indices = @transform_4, window_bounds = array<i64: 1, 128>}, {transform_indices = @transform_5, window_bounds = array<i64: 8, 128>}]} {
    %c0 = arith.constant 0 : index
    %c0_0 = arith.constant 0 : index
    %0 = vector.load %arg1[%c0, %c0_0] : memref<8x32xbf16, #tpu.memory_space<vmem>>, vector<8x32xbf16>
    %c0_1 = arith.constant 0 : index
    %c0_2 = arith.constant 0 : index
    %1 = vector.load %arg2[%c0_1, %c0_2] : memref<32x128xbf16, #tpu.memory_space<vmem>>, vector<32x128xbf16>
    %cst = arith.constant dense<0.000000e+00> : vector<8x128xf32>
    %2 = tpu.matmul %0, %1, %cst {dimension_numbers = #tpu.dot_dimension_numbers<[1], [0], [0], [1], [0, 0, 1, 1], [], []>} : vector<8x32xbf16>, vector<32x128xbf16>, vector<8x128xf32> -> vector<8x128xf32>
    %c0_3 = arith.constant 0 : index
    %c0_4 = arith.constant 0 : index
    %3 = vector.load %arg3[%c0_3, %c0_4] : memref<1x128xf32, #tpu.memory_space<vmem>>, vector<1x128xf32>
    %4 = vector.broadcast %3 : vector<1x128xf32> to vector<8x128xf32>
    %5 = arith.addf %2, %4 : vector<8x128xf32>
    %cst_5 = arith.constant 0.000000e+00 : f32
    %6 = vector.broadcast %cst_5 : f32 to vector<8x128xf32>
    %7 = arith.maximumf %5, %6 : vector<8x128xf32>
    %8 = arith.truncf %7 : vector<8x128xf32> to vector<8x128xbf16>
    %c0_6 = arith.constant 0 : index
    %c0_7 = arith.constant 0 : index
    %9 = vector.load %arg4[%c0_6, %c0_7] : memref<128x128xbf16, #tpu.memory_space<vmem>>, vector<128x128xbf16>
    %cst_8 = arith.constant dense<0.000000e+00> : vector<8x128xf32>
    %10 = tpu.matmul %8, %9, %cst_8 {dimension_numbers = #tpu.dot_dimension_numbers<[1], [0], [0], [1], [0, 0, 1, 1], [], []>} : vector<8x128xbf16>, vector<128x128xbf16>, vector<8x128xf32> -> vector<8x128xf32>
    %c0_9 = arith.constant 0 : index
    %c0_10 = arith.constant 0 : index
    %11 = vector.load %arg5[%c0_9, %c0_10] : memref<1x128xf32, #tpu.memory_space<vmem>>, vector<1x128xf32>
    %12 = vector.broadcast %11 : vector<1x128xf32> to vector<8x128xf32>
    %13 = arith.addf %10, %12 : vector<8x128xf32>
    %c0_11 = arith.constant 0 : index
    %c0_12 = arith.constant 0 : index
    %14 = vector.load %arg6[%c0_11, %c0_12] : memref<8x128xf32, #tpu.memory_space<vmem>>, vector<8x128xf32>
    tpu.vector_store %arg6[%c0_11, %c0_12], %13 {strides = array<i32>} : memref<8x128xf32, #tpu.memory_space<vmem>>, vector<8x128xf32>,
    return
  }
  func.func @transform_0(%arg0: i32) -> (i32, i32) {
    %c0_i32 = arith.constant 0 : i32
    %c0_i32_0 = arith.constant 0 : i32
    return %arg0, %c0_i32 : i32, i32
  }
  func.func @transform_1(%arg0: i32) -> (i32, i32) {
    %c0_i32 = arith.constant 0 : i32
    %c0_i32_0 = arith.constant 0 : i32
    %c0_i32_1 = arith.constant 0 : i32
    return %c0_i32, %c0_i32_0 : i32, i32
  }
  func.func @transform_2(%arg0: i32) -> (i32, i32) {
    %c0_i32 = arith.constant 0 : i32
    %c0_i32_0 = arith.constant 0 : i32
    %c0_i32_1 = arith.constant 0 : i32
    return %c0_i32, %c0_i32_0 : i32, i32
  }
  func.func @transform_3(%arg0: i32) -> (i32, i32) {
    %c0_i32 = arith.constant 0 : i32
    %c0_i32_0 = arith.constant 0 : i32
    %c0_i32_1 = arith.constant 0 : i32
    return %c0_i32, %c0_i32_0 : i32, i32
  }
  func.func @transform_4(%arg0: i32) -> (i32, i32) {
    %c0_i32 = arith.constant 0 : i32
    %c0_i32_0 = arith.constant 0 : i32
    %c0_i32_1 = arith.constant 0 : i32
    return %c0_i32, %c0_i32_0 : i32, i32
  }
  func.func @transform_5(%arg0: i32) -> (i32, i32) {
    %c0_i32 = arith.constant 0 : i32
    %c0_i32_0 = arith.constant 0 : i32
    return %arg0, %c0_i32 : i32, i32
  }
}

</mosaic_0001>

<bundles_post_ra>
// kernel: two_layer_net.1
= control target key start
LH: loop header
LB: loop body
LE: loop exit
PB: predicated region body
PF: predicated region fallthrough
CT: control target
= control target key end

     0   :  { %10 = vsyncpa [#allocation3], 0  ;;  %s439_s0 = inlined_call_operand.vmem [shape: bf16[8,32], index: 0, kind: input, shape index: {}]   ;;  %s440_s1 = inlined_call_operand.hbm [shape: bf16[32,128], index: 1, kind: input, shape index: {}]   ;;  %s441_s2 = inlined_call_operand.vmem [shape: f32[1,128], index: 2, kind: input, shape index: {}]   ;;  %s442_s3 = inlined_call_operand.hbm [shape: bf16[128,128], index: 3, kind: input, shape index: {}]   ;;  %s443_s4 = inlined_call_operand.vmem [shape: f32[1,128], index: 4, kind: input, shape index: {}]   ;;  %s444_s5 = inlined_call_operand.hbm [shape: f32[8,128], index: 5, kind: output, shape index: {}]  }
   0x1   :  { %11 = vsyncpa [#allocation6], 0 }
   0x2   :  { %12 = vsyncpa [#allocation4], 0  ;;  %s384_s18 = smov [#allocation2]  }
   0x3   :  { %s20_s19 = sshll.u32 %s384_s18, 4  ;;  %s21_s19 = int_to_ptr.vmem [resolvable:$true] %s20_s19 }
   0x4   :  { %s326_s20 = scalar_lea.vmem %s21_s19, 256  ;;  %p331_p1 = scmp.lt.s32.totalorder %s21_s19, %s21_s19 }
   0x5   :  { %p327_p0 = scmp.ne.s32.totalorder %s21_s19, %s326_s20  ;;  %p332_p2 = scmp.lt.s32.totalorder %s326_s20, %s326_s20 }
   0x7   :  { %p333_p3 = por %p332_p2, %p331_p1 }
   0x9   :  { %p334_p4 = pnand %p333_p3, %p327_p0 }
   0xb   :  { %337 = shalt.err (!%p334_p4)
}
   0xc   :  { %s385_s21 = smov 64   ;;  %s386_s22 = smov 4  }
   0xd   :  { %26 = dma.hbm_to_vmem [thread:$0]  %s440_s1, 256, %s21_s19, [#allocation3], %s385_s21, %s385_s21, %s386_s22  }
   0xe   :  { %s387_s25 = smov [#allocation5]  }
   0xf   :  { %s34_s26 = sshll.u32 %s387_s25, 4  ;;  %s35_s26 = int_to_ptr.vmem [resolvable:$true] %s34_s26 }
  0x10   :  { %s346_s27 = scalar_lea.vmem %s35_s26, 1024  ;;  %p351_p6 = scmp.lt.s32.totalorder %s35_s26, %s35_s26 }
  0x11   :  { %p347_p5 = scmp.ne.s32.totalorder %s35_s26, %s346_s27  ;;  %p352_p7 = scmp.lt.s32.totalorder %s346_s27, %s346_s27 }
  0x13   :  { %p353_p8 = por %p352_p7, %p351_p6 }
  0x15   :  { %p354_p9 = pnand %p353_p8, %p347_p5 }
  0x17   :  { %357 = shalt.err (!%p354_p9)
}
  0x18   :  { %40 = dma.hbm_to_vmem [thread:$0]  %s442_s3, 1024, %s35_s26, [#allocation6], %s385_s21, %s385_s21, %s386_s22  }
  0x19   :  { %378 = dma.done.wait [#allocation3], 256  }
  0x1a   :  { %379 = vsyncadd [#allocation3], 4294967040 }
  0x1b   :  { %380 = dma.done.wait [#allocation6], 1024  }
  0x1c   :  { %381 = vsyncadd [#allocation6], 4294966272  ;;  %v388_v0 = vmov 0.0   ;;  %vm389_vm0 = vmmov 0   ;;  %v308_v1 = vld [vmem:[#allocation2 + $0x8] sm:$0xff]   ;;  %v309_v2 = vld [vmem:[#allocation2] sm:$0xff]  }
  0x1d   :  { %273 = vmatprep.subr.bf16.mxu0 %v388_v0  ;;  %277 = vmatprep.mubr.msk.bf16.mxu0 %vm389_vm0, %v388_v0  ;;  %v310_v3 = vld [vmem:[#allocation5 + $0x38] sm:$0xff]   ;;  %vm74_vm1 = vcmask 261120   ;;  %v311_v4 = vld [vmem:[#allocation5 + $0x30] sm:$0xff]   ;;  %v312_v6 = vld [vmem:[#allocation5 + $0x28] sm:$0xff]   ;;  %s390_s8 = smov [#allocation7]  }
  0x1e   :  { %281 = vmatprep.subr.bf16.mxu1 %v388_v0  ;;  %297 = vmatprep.mubr.msk.bf16.mxu1 %vm389_vm0, %v388_v0  ;;  %v50_v5 = vld [vmem:[%s439_s0] sm:$0xf]  ;;  %v313_v7 = vld [vmem:[#allocation5 + $0x20] sm:$0xff]   ;;  %v314_v8 = vld [vmem:[#allocation5 + $0x18] sm:$0xff]   ;;  %s238_s9 = sshll.u32 %s390_s8, 4  ;;  %s239_s9 = int_to_ptr.vmem [resolvable:$true] %s238_s9 }
  0x1f   :  { %274 = vmatpush3.bf16.msra.mxu0 %v308_v1  ;;  %282 = vmatpush3.bf16.msra.mxu1 %v310_v3  ;;  %v315_v9 = vld [vmem:[#allocation5 + $0x10] sm:$0xff]   ;;  %v316_v10 = vld [vmem:[#allocation5 + $0x8] sm:$0xff]   ;;  %v317_v11 = vld [vmem:[#allocation5] sm:$0xff]   ;;  %p363_p11 = scmp.lt.s32.totalorder %s239_s9, %s239_s9 }
  0x20   :  { %275 = vmatprep.subr.bf16.mxu0 %v388_v0  ;;  %283 = vmatprep.subr.bf16.mxu1 %v388_v0  ;;  %v248_v12 = vld [vmem:[%s441_s2] ss:$0 sm:$0xff]  ;;  %s358_s2 = scalar_lea.vmem %s239_s9, 128 }
  0x21   :  { %v252_v20 = vld [vmem:[%s443_s4] ss:$0 sm:$0xff]  ;;  %p359_p10 = scmp.ne.s32.totalorder %s239_s9, %s358_s2  ;;  %p364_p12 = scmp.lt.s32.totalorder %s358_s2, %s358_s2 }
  0x23   :  { %276 = vmatpush3.bf16.msra.mxu0 %v309_v2  ;;  %284 = vmatpush3.bf16.msra.mxu1 %v311_v4  ;;  %p365_p13 = por %p364_p12, %p363_p11 }
  0x24   :  { %285 = vmatprep.subr.bf16.mxu1 %v388_v0 }
  0x25   :  { %p366_p0 = pnand %p365_p13, %p359_p10 }
  0x26   :  { %278 = vmatmul.mubr.msk.bf16.vlgmr.msra.gmra.mxu0 %vm74_vm1, %v50_v5 }
  0x27   :  { %286 = vmatpush3.bf16.msra.mxu1 %v312_v6 }
  0x28   :  { %287 = vmatprep.subr.bf16.mxu1 %v388_v0 }
  0x2b   :  { %288 = vmatpush3.bf16.msra.mxu1 %v313_v7 }
  0x2c   :  { %289 = vmatprep.subr.bf16.mxu1 %v388_v0 }
  0x2f   :  { %290 = vmatpush3.bf16.msra.mxu1 %v314_v8 }
  0x30   :  { %291 = vmatprep.subr.bf16.mxu1 %v388_v0 }
  0x33   :  { %292 = vmatpush3.bf16.msra.mxu1 %v315_v9 }
  0x34   :  { %293 = vmatprep.subr.bf16.mxu1 %v388_v0 }
  0x37   :  { %294 = vmatpush3.bf16.msra.mxu1 %v316_v10 }
  0x38   :  { %295 = vmatprep.subr.bf16.mxu1 %v388_v0 }
  0x3b   :  { %296 = vmatpush3.bf16.msra.mxu1 %v317_v11 }
  0xe6   :  { %v112_v13 = vpop.f32.mrf.mxu0 }
  0xe7   :  { %v113_v14 = vadd.f32 %v248_v12, %v112_v13 }
  0xe8   :  { %v279_v15 = vpop.f32.mrf.mxu0 }
  0xe9   :  { %v118_v16 = vmax.f32 %v113_v14, 0.0 }
  0xea   :  { %v115_v17 = vpop.f32.mrf.mxu0 }
  0xeb   :  { %v119_v18 = vpack.c.bf16 %v118_v16, %v118_v16 }
  0xec   :  { %v280_v19 = vpop.f32.mrf.mxu0 }
  0xed   :  { %298 = vmatmul.mubr.bf16.vlgmr.msra.gmra.mxu1 %v119_v18 }
 0x1ad   :  { %v225_v21 = vpop.f32.mrf.mxu1 }
 0x1ae   :  { %v226_v22 = vadd.f32 %v252_v20, %v225_v21 }
 0x1af   :  { %v299_v23 = vpop.f32.mrf.mxu1 }
 0x1b0   :  { %231 = vst [vmem:[#allocation7] sm:$0xff] %v226_v22 }
 0x1b1   :  { %v228_v24 = vpop.f32.mrf.mxu1 }
 0x1b2   :  { %369 = shalt.err (!%p366_p0)
}
 0x1b3   :  { %241 = dma.vmem_to_hbm [thread:$0]  %s239_s9, 128, %s444_s5, [#allocation4]   ;;  %v300_v25 = vpop.f32.mrf.mxu1 }
 0x1b4   :  { %382 = dma.done.wait [#allocation4], 128  }
 0x1b5   :  { %383 = vsyncadd [#allocation4], 4294967168 }
 0x1b6   :  { %245 = vsyncpa [#allocation3], 1 }
 0x1b7   :  { %246 = vsyncpa [#allocation6], 1 }
 0x1b8   :  { %247 = vsyncpa [#allocation4], 1 }

</bundles_post_ra>
